<compile_context>
chip_gen: v7x
topology: tpu7x:2x2x1
jax: 0.10.0
libtpu: 0.0.40
codegen_flags: <defaults>
</compile_context>

<pallas_src>
import functools

import jax
import jax.numpy as jnp
from jax.experimental import pallas as pl
from jax.experimental.pallas import tpu as pltpu


def _round_up(n, m):
    return ((n + m - 1) // m) * m


def mlp_kernel(x_ref, w1_ref, b1_ref, w2_ref, b2_ref, o_ref):
    # fc1: [TM, I] (bf16) @ [I, H] (bf16) -> f32 accumulation on the MXU.
    h = jnp.dot(x_ref[...], w1_ref[...], preferred_element_type=jnp.float32)
    # Bias + ReLU epilogue in f32 (v5e VPU has no native bf16).
    h = jnp.maximum(h + b1_ref[...], 0.0)
    # fc2: cast the activation back to bf16 for the MXU, accumulate in f32.
    out = jnp.dot(h.astype(w2_ref.dtype), w2_ref[...],
                  preferred_element_type=jnp.float32)
    o_ref[...] = (out + b2_ref[...]).astype(o_ref.dtype)


def prepare_params(w1_t, b1, w2_t, b2):
    """One-time parameter preprocessing (hoisted out of the per-call forward).

    w1_t: [I, H], b1: [1, H] or [H], w2_t: [H, O], b2: [1, O] or [O].
    Returns bf16 weights and f32 biases with only the output lane dim O padded
    to a multiple of 128 (lane-dense output stores). I and H stay unpadded:
    full-extent blocks already satisfy the (8,128) tiling rule.
    """
    O = w2_t.shape[1]
    O_pad = _round_up(O, 128)
    w1_p = w1_t.astype(jnp.bfloat16)
    b1_p = jnp.reshape(b1, (1, -1)).astype(jnp.float32)
    w2_p = jnp.pad(w2_t, ((0, 0), (0, O_pad - O))).astype(jnp.bfloat16)
    b2_p = jnp.pad(jnp.reshape(b2, (1, -1)),
                   ((0, 0), (0, O_pad - O))).astype(jnp.float32)
    return w1_p, b1_p, w2_p, b2_p


@functools.partial(jax.jit, static_argnames=("out_features", "tm", "out_dtype"))
def neural_network_forward(x, w1_p, b1_p, w2_p, b2_p, *,
                           out_features, tm=256, out_dtype=None):
    """x: [B, I]; w1_p: [I, H] bf16; b1_p: [1, H] f32;
    w2_p: [H, O_pad] bf16; b2_p: [1, O_pad] f32 (from prepare_params)."""
    B, I = x.shape
    H = w1_p.shape[1]
    O_pad = w2_p.shape[1]
    out_dtype = x.dtype if out_dtype is None else out_dtype
    # NOTE: pass out_dtype=jnp.bfloat16 to halve output writeback bytes when
    # downstream consumers accept bf16.

    # --- Batch tiling ------------------------------------------------------
    # Multiple of 16 (bf16 sublane packing); capped at the (rounded) batch.
    tm_req = max(16, _round_up(int(tm), 16))
    b_rounded = _round_up(B, 16)
    tm_eff = min(tm_req, b_rounded)
    # v7x has two TensorCores: ensure >= 2 grid steps on the "parallel" batch
    # axis whenever the batch is big enough to split.
    if tm_eff >= b_rounded and b_rounded >= 32:
        tm_eff = _round_up(b_rounded // 2, 16)
    B_pad = _round_up(B, tm_eff)
    grid = (B_pad // tm_eff,)

    # Per-call activation prep only (weights were prepared once, offline).
    x_p = jnp.pad(x, ((0, B_pad - B), (0, 0))).astype(jnp.bfloat16)

    # --- VMEM budget -------------------------------------------------------
    out_itemsize = jnp.dtype(out_dtype).itemsize
    resident_bytes = (I * H + H * O_pad) * 2 + (H + O_pad) * 4   # single-buffered
    streamed_bytes = 2 * tm_eff * I * 2 + 2 * tm_eff * O_pad * out_itemsize
    scratch_bytes = 4 * tm_eff * max(H, O_pad) * 4               # h + headroom
    vmem_limit = int(min(64 * 2**20,
                         max(8 * 2**20,
                             2 * (resident_bytes + streamed_bytes + scratch_bytes))))

    flops = 2 * B_pad * I * H + 2 * B_pad * H * O_pad
    bytes_accessed = (x_p.size * 2
                      + w1_p.size * 2 + w2_p.size * 2
                      + b1_p.size * 4 + b2_p.size * 4
                      + B_pad * O_pad * out_itemsize)

    resident = pl.Buffered(1)  # constant index_map -> no double-buffering
    out_padded = pl.pallas_call(
        mlp_kernel,
        out_shape=jax.ShapeDtypeStruct((B_pad, O_pad), out_dtype),
        grid_spec=pl.GridSpec(
            grid=grid,
            in_specs=[
                pl.BlockSpec((tm_eff, I), lambda i: (i, 0)),        # x tile
                pl.BlockSpec((I, H), lambda i: (0, 0),
                             pipeline_mode=resident),               # w1
                pl.BlockSpec((1, H), lambda i: (0, 0),
                             pipeline_mode=resident),               # b1
                pl.BlockSpec((H, O_pad), lambda i: (0, 0),
                             pipeline_mode=resident),               # w2
                pl.BlockSpec((1, O_pad), lambda i: (0, 0),
                             pipeline_mode=resident),               # b2
            ],
            out_specs=pl.BlockSpec((tm_eff, O_pad), lambda i: (i, 0)),
        ),
        compiler_params=pltpu.CompilerParams(
            dimension_semantics=("parallel",),   # megacore-shardable on v7x
            vmem_limit_bytes=vmem_limit,
        ),
        cost_estimate=pl.CostEstimate(
            flops=flops, transcendentals=0, bytes_accessed=bytes_accessed),
    )(x_p, w1_p, b1_p, w2_p, b2_p)

    return out_padded[:B, :out_features]


def init_linear_params(key, in_features, out_features, dtype=jnp.float32):
    """PyTorch nn.Linear default init: U(-1/sqrt(fan_in), 1/sqrt(fan_in))."""
    kw, kb = jax.random.split(key)
    bound = 1.0 / (in_features ** 0.5)
    # Stored already transposed: [in_features, out_features]
    w_t = jax.random.uniform(
        kw, (in_features, out_features), dtype, minval=-bound, maxval=bound)
    b = jax.random.uniform(
        kb, (1, out_features), dtype, minval=-bound, maxval=bound)
    return w_t, b


if __name__ == "__main__":
    input_size, hidden_size, output_size = 32, 64, 16
    batch = 64

    key = jax.random.PRNGKey(0)
    k_x, k_fc1, k_fc2 = jax.random.split(key, 3)

    x = jax.random.normal(k_x, (batch, input_size), jnp.float32)
    w1_t, b1 = init_linear_params(k_fc1, input_size, hidden_size)
    w2_t, b2 = init_linear_params(k_fc2, hidden_size, output_size)

    # One-time weight prep (cast to bf16, pad O to 128) — hoisted out of forward.
    w1_p, b1_p, w2_p, b2_p = prepare_params(w1_t, b1, w2_t, b2)

    # Default tm=256 clamps to 32 here -> grid=(2,), exercising the pipeline
    # and the dual-TensorCore split.
    out = neural_network_forward(x, w1_p, b1_p, w2_p, b2_p,
                                 out_features=output_size)
    out = jax.block_until_ready(out)
    assert out.shape == (batch, output_size)

    # Reference mirrors the kernel's bf16-input / f32-accumulate math.
    def bf(a):
        return a.astype(jnp.bfloat16).astype(jnp.float32)

    h_ref = jnp.maximum(bf(x) @ bf(w1_t) + b1, 0.0)
    ref = bf(h_ref) @ bf(w2_t) + b2
    assert jnp.allclose(out, ref, atol=1e-2, rtol=1e-2), (
        float(jnp.max(jnp.abs(out - ref))))

    print("KERNEL_OK")
</pallas_src>

<mosaic_0001>
module attributes {stable_mosaic.version = 11 : i64} {
  func.func @mlp_kernel(%arg0: i32, %arg1: memref<32x32xbf16, #tpu.memory_space<vmem>>, %arg2: memref<32x64xbf16, #tpu.memory_space<vmem>>, %arg3: memref<1x64xf32, #tpu.memory_space<vmem>>, %arg4: memref<64x128xbf16, #tpu.memory_space<vmem>>, %arg5: memref<1x128xf32, #tpu.memory_space<vmem>>, %arg6: memref<32x128xf32, #tpu.memory_space<vmem>>) attributes {dimension_semantics = [#tpu.dimension_semantics<parallel>], iteration_bounds = array<i64: 2>, scalar_prefetch = 0 : i64, scratch_operands = 0 : i64, tpu.core_type = #tpu.core_type<tc>, window_params = [{transform_indices = @transform_0, window_bounds = array<i64: 32, 32>}, {pipeline_mode = #tpu.pipeline_mode<synchronous>, transform_indices = @transform_1, window_bounds = array<i64: 32, 64>}, {pipeline_mode = #tpu.pipeline_mode<synchronous>, transform_indices = @transform_2, window_bounds = array<i64: 1, 64>}, {pipeline_mode = #tpu.pipeline_mode<synchronous>, transform_indices = @transform_3, window_bounds = array<i64: 64, 128>}, {pipeline_mode = #tpu.pipeline_mode<synchronous>, transform_indices = @transform_4, window_bounds = array<i64: 1, 128>}, {transform_indices = @transform_5, window_bounds = array<i64: 32, 128>}]} {
    %c0 = arith.constant 0 : index
    %c0_0 = arith.constant 0 : index
    %0 = vector.load %arg1[%c0, %c0_0] : memref<32x32xbf16, #tpu.memory_space<vmem>>, vector<32x32xbf16>
    %c0_1 = arith.constant 0 : index
    %c0_2 = arith.constant 0 : index
    %1 = vector.load %arg2[%c0_1, %c0_2] : memref<32x64xbf16, #tpu.memory_space<vmem>>, vector<32x64xbf16>
    %cst = arith.constant dense<0.000000e+00> : vector<32x64xf32>
    %2 = tpu.matmul %0, %1, %cst {dimension_numbers = #tpu.dot_dimension_numbers<[1], [0], [0], [1], [0, 0, 1, 1], [], []>} : vector<32x32xbf16>, vector<32x64xbf16>, vector<32x64xf32> -> vector<32x64xf32>
    %c0_3 = arith.constant 0 : index
    %c0_4 = arith.constant 0 : index
    %3 = vector.load %arg3[%c0_3, %c0_4] : memref<1x64xf32, #tpu.memory_space<vmem>>, vector<1x64xf32>
    %4 = vector.broadcast %3 : vector<1x64xf32> to vector<32x64xf32>
    %5 = arith.addf %2, %4 : vector<32x64xf32>
    %cst_5 = arith.constant 0.000000e+00 : f32
    %6 = vector.broadcast %cst_5 : f32 to vector<32x64xf32>
    %7 = arith.maximumf %5, %6 : vector<32x64xf32>
    %8 = arith.truncf %7 : vector<32x64xf32> to vector<32x64xbf16>
    %c0_6 = arith.constant 0 : index
    %c0_7 = arith.constant 0 : index
    %9 = vector.load %arg4[%c0_6, %c0_7] : memref<64x128xbf16, #tpu.memory_space<vmem>>, vector<64x128xbf16>
    %cst_8 = arith.constant dense<0.000000e+00> : vector<32x128xf32>
    %10 = tpu.matmul %8, %9, %cst_8 {dimension_numbers = #tpu.dot_dimension_numbers<[1], [0], [0], [1], [0, 0, 1, 1], [], []>} : vector<32x64xbf16>, vector<64x128xbf16>, vector<32x128xf32> -> vector<32x128xf32>
    %c0_9 = arith.constant 0 : index
    %c0_10 = arith.constant 0 : index
    %11 = vector.load %arg5[%c0_9, %c0_10] : memref<1x128xf32, #tpu.memory_space<vmem>>, vector<1x128xf32>
    %12 = vector.broadcast %11 : vector<1x128xf32> to vector<32x128xf32>
    %13 = arith.addf %10, %12 : vector<32x128xf32>
    %c0_11 = arith.constant 0 : index
    %c0_12 = arith.constant 0 : index
    %14 = vector.load %arg6[%c0_11, %c0_12] : memref<32x128xf32, #tpu.memory_space<vmem>>, vector<32x128xf32>
    tpu.vector_store %arg6[%c0_11, %c0_12], %13 {strides = array<i32>} : memref<32x128xf32, #tpu.memory_space<vmem>>, vector<32x128xf32>,
    return
  }
  func.func @transform_0(%arg0: i32) -> (i32, i32) {
    %c0_i32 = arith.constant 0 : i32
    %c0_i32_0 = arith.constant 0 : i32
    return %arg0, %c0_i32 : i32, i32
  }
  func.func @transform_1(%arg0: i32) -> (i32, i32) {
    %c0_i32 = arith.constant 0 : i32
    %c0_i32_0 = arith.constant 0 : i32
    %c0_i32_1 = arith.constant 0 : i32
    return %c0_i32, %c0_i32_0 : i32, i32
  }
  func.func @transform_2(%arg0: i32) -> (i32, i32) {
    %c0_i32 = arith.constant 0 : i32
    %c0_i32_0 = arith.constant 0 : i32
    %c0_i32_1 = arith.constant 0 : i32
    return %c0_i32, %c0_i32_0 : i32, i32
  }
  func.func @transform_3(%arg0: i32) -> (i32, i32) {
    %c0_i32 = arith.constant 0 : i32
    %c0_i32_0 = arith.constant 0 : i32
    %c0_i32_1 = arith.constant 0 : i32
    return %c0_i32, %c0_i32_0 : i32, i32
  }
  func.func @transform_4(%arg0: i32) -> (i32, i32) {
    %c0_i32 = arith.constant 0 : i32
    %c0_i32_0 = arith.constant 0 : i32
    %c0_i32_1 = arith.constant 0 : i32
    return %c0_i32, %c0_i32_0 : i32, i32
  }
  func.func @transform_5(%arg0: i32) -> (i32, i32) {
    %c0_i32 = arith.constant 0 : i32
    %c0_i32_0 = arith.constant 0 : i32
    return %arg0, %c0_i32 : i32, i32
  }
}

</mosaic_0001>

<bundles_post_ra>
// kernel: neural_network_forward.1
= control target key start
LH: loop header
LB: loop body
LE: loop exit
PB: predicated region body
PF: predicated region fallthrough
CT: control target
= control target key end

     0   :  { %s592_s18 = smov 0   ;;  %s637_s0 = inlined_call_operand.vmem [shape: bf16[64,32], index: 0, kind: input, shape index: {}]   ;;  %s638_s1 = inlined_call_operand.vmem [shape: bf16[32,64], index: 1, kind: input, shape index: {}]   ;;  %s639_s2 = inlined_call_operand.vmem [shape: f32[1,64], index: 2, kind: input, shape index: {}]   ;;  %s640_s3 = inlined_call_operand.vmem [shape: bf16[64,128], index: 3, kind: input, shape index: {}]   ;;  %s641_s4 = inlined_call_operand.vmem [shape: f32[1,128], index: 4, kind: input, shape index: {}]   ;;  %s642_s5 = inlined_call_operand.vmem [shape: f32[64,128], index: 5, kind: output, shape index: {}]  }
   0x1 LB: > { %s483_s19 = sadd.s32 4294967295, %s560_s18   ;;  %p487_p0 = scmp.ge.s32.totalorder %s560_s18, 1  ;;  %s560_s18 = sphi %s592_s18, %s15_s18  }
   0x2   : > { %p188_p1 = scmp.lt.s32.totalorder %s560_s18, 3 }
   0x4   : > { %p189_p2 = pnand %p487_p0, %p188_p1 }
   0x5   : > { %v546_v0 = vld [vmem:[%s638_s1] sm:$0xff] (!%p189_p2)   ;;  %s488_s22 = sshll.u32 (!%p189_p2), %s483_s19, 2  ;;  %v547_v1 = vld [vmem:[%s638_s1 + $0x8] sm:$0xff] (!%p189_p2)   ;;  %vm266_vm0 = vcmask (!%p189_p2), 261120   ;;  %v552_v6 = vld [vmem:[%s640_s3 + $0x10] sm:$0xff] (!%p189_p2)   ;;  %vm367_vm1 = vcmask (!%p189_p2), 523264  }
   0x6   : > { %192 = sbr.rel (%p189_p2) target bundleno = 458 (0x1ca), region = 40  ;;  %p217_p3 = scmp.lt.s32.totalorder (!%p189_p2), %s488_s22, 7  ;;  %518 = vmatprep.subr.bf16.mxu0 (!%p189_p2), %v546_v0  ;;  %v550_v2 = vld [vmem:[%s640_s3] sm:$0xff] (!%p189_p2)   ;;  %v551_v3 = vld [vmem:[%s640_s3 + $0x8] sm:$0xff] (!%p189_p2)   ;;  %v553_v7 = vld [vmem:[%s640_s3 + $0x18] sm:$0xff] (!%p189_p2)  }
   0x7   : > { %519 = vmatpush3.bf16.msra.mxu0 (!%p189_p2), %v546_v0  ;;  %526 = vmatprep.subr.bf16.mxu1 (!%p189_p2), %v550_v2  ;;  %v492_v8 = vld [vmem:[%s639_s2] ss:$0 sm:$0xff] (!%p189_p2) }
   0x8   : > { %520 = vmatprep.subr.bf16.mxu0 (!%p189_p2), %v547_v1  ;;  %527 = vmatpush3.bf16.msra.mxu1 (!%p189_p2), %v550_v2  ;;  %v499_v23 = vld [vmem:[%s641_s4] ss:$0 sm:$0xff] (!%p189_p2) }
   0x9   : > { %528 = vmatprep.subr.bf16.mxu1 (!%p189_p2), %v551_v3 }
   0xb   : > { %521 = vmatpush3.bf16.msra.mxu0 (!%p189_p2), %v547_v1 }
   0xc   : > { %529 = vmatpush3.bf16.msra.mxu1 (!%p189_p2), %v551_v3 }
   0xd   : > { %s644_s22 = smov (!%p217_p3, %s488_s22), 7  ;;  %530 = vmatprep.subr.bf16.mxu1 %v552_v6 }
   0xe   : > { %s489_s29 = sshll.u32 %s644_s22, 2  ;;  %s491_s14 = sshll.u32 %s644_s22, 3 }
   0xf   : > { %s220_s7 = scalar_lea.vmem %s637_s0, %s489_s29  ;;  %s226_s20 = scalar_lea.vmem %s642_s5, %s491_s14 }
  0x10   : > { %v548_v4 = vld [vmem:[%s220_s7] sm:$0xff]   ;;  %v549_v5 = vld [vmem:[%s220_s7 + $0x8] sm:$0xff]   ;;  %531 = vmatpush3.bf16.msra.mxu1 %v552_v6 }
  0x11   : > { %522 = vmatprep.mubr.msk.bf16.mxu0 %vm266_vm0, %v548_v4  ;;  %532 = vmatprep.subr.bf16.mxu1 %v553_v7 }
  0x12   : > { %523 = vmatmul.mubr.msk.bf16.vlgmr.msra.gmra.mrb[0].mxu0 %vm266_vm0, %v549_v5 }
  0x14   : > { %533 = vmatpush3.bf16.msra.mxu1 %v553_v7 }
  0xe5   : > { %v524_v9 = vpop.f32.mrb[0].mxu0 }
  0xe6   : > { %v316_v10 = vadd.f32 %v524_v9, %v492_v8  ;;  %v307_v11 = vpop.f32.mrb[1].mxu0 }
  0xe7   : > { %v308_v12 = vadd.f32 %v492_v8, %v307_v11  ;;  %v525_v13 = vpop.f32.mrb[2].mxu0 }
  0xe8   : > { %v319_v14 = vadd.f32 %v525_v13, %v492_v8  ;;  %v310_v15 = vpop.f32.mrb[3].mxu0  ;;  %v324_v17 = vmax.f32 %v316_v10, 0.0 }
  0xe9   : > { %v311_v16 = vadd.f32 %v492_v8, %v310_v15  ;;  %v322_v19 = vmax.f32 %v308_v12, 0.0 }
  0xea   : > { %v325_v18 = vmax.f32 %v319_v14, 0.0 }
  0xeb   : > { %v323_v20 = vmax.f32 %v311_v16, 0.0 }
  0xec   : > { %v327_v21 = vpack.c.bf16 %v325_v18, %v324_v17 }
  0xed   : > { %v326_v22 = vpack.c.bf16 %v323_v20, %v322_v19 }
  0xef   : > { %534 = vmatprep.mubr.msk.bf16.mxu1 %vm367_vm1, %v326_v22 }
  0xf0   : > { %535 = vmatmul.mubr.msk.bf16.vlgmr.msra.gmra.mrb[0].mxu1 %vm367_vm1, %v327_v21 }
 0x1c3   : > { %v536_v24 = vpop.f32.mrb[0].mxu1 }
 0x1c4   : > { %v408_v25 = vpop.f32.mrb[1].mxu1  ;;  %v417_v30 = vadd.f32 %v536_v24, %v499_v23 }
 0x1c5   : > { %v409_v26 = vadd.f32 %v499_v23, %v408_v25  ;;  %v537_v27 = vpop.f32.mrb[2].mxu1 }
 0x1c6   : > { %v411_v28 = vpop.f32.mrb[3].mxu1  ;;  %v420_v31 = vadd.f32 %v537_v27, %v499_v23  ;;  %425 = vst [vmem:[%s226_s20 + $0x10] sm:$0xff] %v417_v30 }
 0x1c7   : > { %423 = vst [vmem:[%s226_s20] sm:$0xff] %v409_v26  ;;  %v412_v29 = vadd.f32 %v499_v23, %v411_v28 }
 0x1c8   : > { %426 = vst [vmem:[%s226_s20 + $0x18] sm:$0xff] %v420_v31 }
 0x1c9   : > { %424 = vst [vmem:[%s226_s20 + $0x8] sm:$0xff] %v412_v29 }
 0x1ca PF: > { %s15_s18 = sadd.s32 1, %s560_s18  }
 0x1cb   : > { %p12_p4 = scmp.ge.s32.totalorder %s15_s18, 4  }
 0x1cd   :  { %14 = sbr.rel (!%p12_p4) target bundleno = 1 (0x1), region = 70 }

</bundles_post_ra>
